<compile_context>
chip_gen: v7x
topology: tpu7x:2x2x1
jax: 0.10.0
libtpu: 0.0.40
codegen_flags: <defaults>
</compile_context>

<pallas_src>
import jax
import jax.numpy as jnp
from jax.experimental import pallas as pl
from jax.experimental.pallas import tpu as pltpu


def additive_attention_kernel(s_ref, h_ref, w_ref, u_ref, v_ref, ctx_ref, attn_ref):
    bt, T, D = h_ref.shape
    h = h_ref[...]                                            # [bt, T, D] native dtype

    # U @ h_t for all (b, t): one big [bt*T, D] x [D, D] MXU matmul, f32 accum.
    uh = jnp.dot(h.reshape(bt * T, D), u_ref[...],
                 preferred_element_type=jnp.float32).reshape(bt, T, D)
    # W @ s_b : [bt, D] x [D, D], f32 accum.
    ws = jnp.dot(s_ref[...], w_ref[...], preferred_element_type=jnp.float32)

    energy = jnp.tanh(uh + ws[:, None, :])                    # [bt, T, D] (EUP tanh)

    # scores_{b,t} = v . energy_{b,t}: lane-dense multiply + lane reduce.
    scores = jnp.sum(energy * v_ref[...].astype(jnp.float32), axis=-1)   # [bt, T]

    # Numerically-stable softmax over the sequence axis, in f32.
    m = jnp.max(scores, axis=-1, keepdims=True)
    e = jnp.exp(scores - m)
    attn = e / jnp.sum(e, axis=-1, keepdims=True)             # [bt, T]
    # TODO(synk): dropout on the attention weights is not implemented
    # (inference / p=0 path of the reference module).

    # context_b = sum_t attn_{b,t} * h_{b,t}
    ctx = jnp.sum(attn[:, :, None] * h.astype(jnp.float32), axis=1)      # [bt, D]

    ctx_ref[...] = ctx.astype(ctx_ref.dtype)
    attn_ref[...] = attn.astype(attn_ref.dtype)


def _pick_batch_tile(B, T):
    """Batch tile so the h@U matmul sees ~1024 rows per grid step, keeping the
    sublane (batch) block dim either == B or a multiple of 8."""
    target = max(1, 1024 // max(T, 1))
    bt = min(B, target)
    if bt == B:
        return bt
    bt = (bt // 8) * 8
    while bt >= 8 and B % bt:
        bt -= 8
    return bt if bt >= 8 and B % bt == 0 else B


def additive_attention(s, h, w, u, v, *, batch_tile=None):
    B, T, D = h.shape
    assert s.shape == (B, D)
    assert w.shape == (D, D) and u.shape == (D, D)
    v_row = v.reshape(1, D)  # module stores v as [D, 1]; use a lane-dense row

    if batch_tile is None:
        batch_tile = _pick_batch_tile(B, T)
    assert B % batch_tile == 0, "batch must be divisible by batch_tile"
    grid = (B // batch_tile,)

    ctx, attn = pl.pallas_call(
        additive_attention_kernel,
        out_shape=(
            jax.ShapeDtypeStruct((B, D), h.dtype),
            jax.ShapeDtypeStruct((B, T), jnp.float32),
        ),
        grid_spec=pltpu.PrefetchScalarGridSpec(
            num_scalar_prefetch=0,
            grid=grid,
            in_specs=[
                pl.BlockSpec((batch_tile, D), lambda i: (i, 0)),        # s
                pl.BlockSpec((batch_tile, T, D), lambda i: (i, 0, 0)),  # h
                pl.BlockSpec((D, D), lambda i: (0, 0)),                 # W (resident)
                pl.BlockSpec((D, D), lambda i: (0, 0)),                 # U (resident)
                pl.BlockSpec((1, D), lambda i: (0, 0)),                 # v row (resident)
            ],
            out_specs=[
                pl.BlockSpec((batch_tile, D), lambda i: (i, 0)),        # context
                pl.BlockSpec((batch_tile, T), lambda i: (i, 0)),        # attn
            ],
        ),
        compiler_params=pltpu.CompilerParams(
            dimension_semantics=("parallel",),
        ),
    )(s, h, w, u, v_row)
    return ctx, attn


def additive_attention_ref(s, h, w, u, v):
    v_row = v.reshape(1, -1)
    ws = s @ w                                            # [B, D]
    uh = jnp.einsum("btd,de->bte", h, u)                  # [B, T, D]
    energy = jnp.tanh(ws[:, None, :] + uh)
    scores = jnp.sum(energy * v_row, axis=-1)             # [B, T]
    attn = jax.nn.softmax(scores, axis=-1)
    ctx = jnp.einsum("bt,btd->bd", attn, h)               # [B, D]
    return ctx, attn


def _make_inputs(key, B, T, D, dtype=jnp.float32):
    ks, kh, kw, ku, kv = jax.random.split(key, 5)
    scale = 1.0 / (D ** 0.5)
    s = jax.random.normal(ks, (B, D), dtype)
    h = jax.random.normal(kh, (B, T, D), dtype)
    w = jax.random.normal(kw, (D, D), dtype) * scale
    u = jax.random.normal(ku, (D, D), dtype) * scale
    v = jax.random.normal(kv, (D, 1), dtype) * scale
    return s, h, w, u, v


if __name__ == "__main__":
    key = jax.random.PRNGKey(0)
    k_small, k_big = jax.random.split(key, 2)

    # --- Small, module-consistent smoke test: batch=2, seq=8, hidden=32 ------
    B, T, D = 2, 8, 32
    s, h, w, u, v = _make_inputs(k_small, B, T, D)
    ctx, attn = additive_attention(s, h, w, u, v)
    ctx = jax.block_until_ready(ctx)
    attn = jax.block_until_ready(attn)
    ctx_ref, attn_ref = additive_attention_ref(s, h, w, u, v)
    assert ctx.shape == (B, D) and attn.shape == (B, T)
    assert jnp.allclose(ctx, ctx_ref, atol=2e-5, rtol=2e-5), "ctx mismatch (small)"
    assert jnp.allclose(attn, attn_ref, atol=2e-5, rtol=2e-5), "attn mismatch (small)"

    # --- Larger lane-dense test: tiled batch (tile=8), T=D=128, grid length 4
    B2, T2, D2 = 32, 128, 128
    s2, h2, w2, u2, v2 = _make_inputs(k_big, B2, T2, D2)
    ctx2, attn2 = additive_attention(s2, h2, w2, u2, v2)
    ctx2 = jax.block_until_ready(ctx2)
    attn2 = jax.block_until_ready(attn2)
    ctx2_ref, attn2_ref = additive_attention_ref(s2, h2, w2, u2, v2)
    assert ctx2.shape == (B2, D2) and attn2.shape == (B2, T2)
    assert jnp.allclose(ctx2, ctx2_ref, atol=2e-5, rtol=2e-5), "ctx mismatch (large)"
    assert jnp.allclose(attn2, attn2_ref, atol=2e-5, rtol=2e-5), "attn mismatch (large)"

    print("KERNEL_OK")
</pallas_src>

<mosaic_0001>
module attributes {stable_mosaic.version = 11 : i64} {
  func.func @additive_attention_kernel(%arg0: i32, %arg1: memref<2x32xf32, #tpu.memory_space<vmem>>, %arg2: memref<2x8x32xf32, #tpu.memory_space<vmem>>, %arg3: memref<32x32xf32, #tpu.memory_space<vmem>>, %arg4: memref<32x32xf32, #tpu.memory_space<vmem>>, %arg5: memref<1x32xf32, #tpu.memory_space<vmem>>, %arg6: memref<2x32xf32, #tpu.memory_space<vmem>>, %arg7: memref<2x8xf32, #tpu.memory_space<vmem>>) attributes {dimension_semantics = [#tpu.dimension_semantics<parallel>], iteration_bounds = array<i64: 1>, scalar_prefetch = 0 : i64, scratch_operands = 0 : i64, tpu.core_type = #tpu.core_type<tc>, window_params = [{transform_indices = @transform_0, window_bounds = array<i64: 2, 32>}, {transform_indices = @transform_1, window_bounds = array<i64: 2, 8, 32>}, {pipeline_mode = #tpu.pipeline_mode<synchronous>, transform_indices = @transform_2, window_bounds = array<i64: 32, 32>}, {pipeline_mode = #tpu.pipeline_mode<synchronous>, transform_indices = @transform_3, window_bounds = array<i64: 32, 32>}, {pipeline_mode = #tpu.pipeline_mode<synchronous>, transform_indices = @transform_4, window_bounds = array<i64: 1, 32>}, {transform_indices = @transform_5, window_bounds = array<i64: 2, 32>}, {transform_indices = @transform_6, window_bounds = array<i64: 2, 8>}]} {
    %c0 = arith.constant 0 : index
    %c0_0 = arith.constant 0 : index
    %c0_1 = arith.constant 0 : index
    %0 = vector.load %arg2[%c0, %c0_0, %c0_1] : memref<2x8x32xf32, #tpu.memory_space<vmem>>, vector<2x8x32xf32>
    %1 = vector.shape_cast %0 : vector<2x8x32xf32> to vector<16x32xf32>
    %c0_2 = arith.constant 0 : index
    %c0_3 = arith.constant 0 : index
    %2 = vector.load %arg4[%c0_2, %c0_3] : memref<32x32xf32, #tpu.memory_space<vmem>>, vector<32x32xf32>
    %cst = arith.constant dense<0.000000e+00> : vector<16x32xf32>
    %3 = tpu.matmul %1, %2, %cst {dimension_numbers = #tpu.dot_dimension_numbers<[1], [0], [0], [1], [0, 0, 1, 1], [], []>} : vector<16x32xf32>, vector<32x32xf32>, vector<16x32xf32> -> vector<16x32xf32>
    %4 = vector.shape_cast %3 : vector<16x32xf32> to vector<2x8x32xf32>
    %c0_4 = arith.constant 0 : index
    %c0_5 = arith.constant 0 : index
    %5 = vector.load %arg1[%c0_4, %c0_5] : memref<2x32xf32, #tpu.memory_space<vmem>>, vector<2x32xf32>
    %c0_6 = arith.constant 0 : index
    %c0_7 = arith.constant 0 : index
    %6 = vector.load %arg3[%c0_6, %c0_7] : memref<32x32xf32, #tpu.memory_space<vmem>>, vector<32x32xf32>
    %cst_8 = arith.constant dense<0.000000e+00> : vector<2x32xf32>
    %7 = tpu.matmul %5, %6, %cst_8 {dimension_numbers = #tpu.dot_dimension_numbers<[1], [0], [0], [1], [0, 0, 1, 1], [], []>} : vector<2x32xf32>, vector<32x32xf32>, vector<2x32xf32> -> vector<2x32xf32>
    %8 = vector.shape_cast %7 : vector<2x32xf32> to vector<2x1x32xf32>
    %9 = vector.broadcast %8 : vector<2x1x32xf32> to vector<2x8x32xf32>
    %10 = arith.addf %4, %9 : vector<2x8x32xf32>
    %11 = math.tanh %10 : vector<2x8x32xf32>
    %c0_9 = arith.constant 0 : index
    %c0_10 = arith.constant 0 : index
    %12 = vector.load %arg5[%c0_9, %c0_10] : memref<1x32xf32, #tpu.memory_space<vmem>>, vector<1x32xf32>
    %13 = vector.shape_cast %12 : vector<1x32xf32> to vector<1x1x32xf32>
    %14 = vector.broadcast %13 : vector<1x1x32xf32> to vector<2x8x32xf32>
    %15 = arith.mulf %11, %14 : vector<2x8x32xf32>
    %cst_11 = arith.constant dense<0.000000e+00> : vector<2x8xf32>
    %16 = vector.multi_reduction <add>, %15, %cst_11 [2] : vector<2x8x32xf32> to vector<2x8xf32>
    %cst_12 = arith.constant dense<0xFF800000> : vector<2xf32>
    %17 = vector.multi_reduction <maximumf>, %16, %cst_12 [1] : vector<2x8xf32> to vector<2xf32>
    %18 = vector.shape_cast %17 : vector<2xf32> to vector<2x1xf32>
    %19 = vector.broadcast %18 : vector<2x1xf32> to vector<2x8xf32>
    %20 = arith.subf %16, %19 : vector<2x8xf32>
    %21 = math.exp %20 : vector<2x8xf32>
    %cst_13 = arith.constant dense<0.000000e+00> : vector<2xf32>
    %22 = vector.multi_reduction <add>, %21, %cst_13 [1] : vector<2x8xf32> to vector<2xf32>
    %23 = vector.shape_cast %22 : vector<2xf32> to vector<2x1xf32>
    %24 = vector.broadcast %23 : vector<2x1xf32> to vector<2x8xf32>
    %25 = arith.divf %21, %24 : vector<2x8xf32>
    %26 = vector.shape_cast %25 : vector<2x8xf32> to vector<2x8x1xf32>
    %27 = vector.broadcast %26 : vector<2x8x1xf32> to vector<2x8x32xf32>
    %28 = arith.mulf %27, %0 : vector<2x8x32xf32>
    %cst_14 = arith.constant dense<0.000000e+00> : vector<2x32xf32>
    %29 = vector.multi_reduction <add>, %28, %cst_14 [1] : vector<2x8x32xf32> to vector<2x32xf32>
    %c0_15 = arith.constant 0 : index
    %c0_16 = arith.constant 0 : index
    %30 = vector.load %arg6[%c0_15, %c0_16] : memref<2x32xf32, #tpu.memory_space<vmem>>, vector<2x32xf32>
    tpu.vector_store %arg6[%c0_15, %c0_16], %29 {strides = array<i32>} : memref<2x32xf32, #tpu.memory_space<vmem>>, vector<2x32xf32>,
    %c0_17 = arith.constant 0 : index
    %c0_18 = arith.constant 0 : index
    %31 = vector.load %arg7[%c0_17, %c0_18] : memref<2x8xf32, #tpu.memory_space<vmem>>, vector<2x8xf32>
    tpu.vector_store %arg7[%c0_17, %c0_18], %25 {strides = array<i32>} : memref<2x8xf32, #tpu.memory_space<vmem>>, vector<2x8xf32>,
    return
  }
  func.func @transform_0(%arg0: i32) -> (i32, i32) {
    %c0_i32 = arith.constant 0 : i32
    %c0_i32_0 = arith.constant 0 : i32
    return %arg0, %c0_i32 : i32, i32
  }
  func.func @transform_1(%arg0: i32) -> (i32, i32, i32) {
    %c0_i32 = arith.constant 0 : i32
    %c0_i32_0 = arith.constant 0 : i32
    %c0_i32_1 = arith.constant 0 : i32
    return %arg0, %c0_i32, %c0_i32_0 : i32, i32, i32
  }
  func.func @transform_2(%arg0: i32) -> (i32, i32) {
    %c0_i32 = arith.constant 0 : i32
    %c0_i32_0 = arith.constant 0 : i32
    %c0_i32_1 = arith.constant 0 : i32
    return %c0_i32, %c0_i32_0 : i32, i32
  }
  func.func @transform_3(%arg0: i32) -> (i32, i32) {
    %c0_i32 = arith.constant 0 : i32
    %c0_i32_0 = arith.constant 0 : i32
    %c0_i32_1 = arith.constant 0 : i32
    return %c0_i32, %c0_i32_0 : i32, i32
  }
  func.func @transform_4(%arg0: i32) -> (i32, i32) {
    %c0_i32 = arith.constant 0 : i32
    %c0_i32_0 = arith.constant 0 : i32
    %c0_i32_1 = arith.constant 0 : i32
    return %c0_i32, %c0_i32_0 : i32, i32
  }
  func.func @transform_5(%arg0: i32) -> (i32, i32) {
    %c0_i32 = arith.constant 0 : i32
    %c0_i32_0 = arith.constant 0 : i32
    return %arg0, %c0_i32 : i32, i32
  }
  func.func @transform_6(%arg0: i32) -> (i32, i32) {
    %c0_i32 = arith.constant 0 : i32
    %c0_i32_0 = arith.constant 0 : i32
    return %arg0, %c0_i32 : i32, i32
  }
}

</mosaic_0001>

<bundles_post_ra>
// kernel: tpu_custom_call.1
= control target key start
LH: loop header
LB: loop body
LE: loop exit
PB: predicated region body
PF: predicated region fallthrough
CT: control target
= control target key end

     0   :  { %12 = vsyncpa [#allocation3], 0  ;;  %s821_s0 = inlined_call_operand.hbm [shape: f32[2,32], index: 0, kind: input, shape index: {}]   ;;  %s822_s1 = inlined_call_operand.hbm [shape: f32[2,8,32], index: 1, kind: input, shape index: {}]   ;;  %s823_s2 = inlined_call_operand.hbm [shape: f32[32,32], index: 2, kind: input, shape index: {}]   ;;  %s824_s3 = inlined_call_operand.hbm [shape: f32[32,32], index: 3, kind: input, shape index: {}]   ;;  %s825_s4 = inlined_call_operand.vmem [shape: f32[1,32], index: 4, kind: input, shape index: {}]   ;;  %s826_s5 = inlined_call_operand.hbm [shape: f32[2,32], index: 5, kind: output, shape index: {0}]   ;;  %s827_s6 = inlined_call_operand.hbm [shape: f32[2,8], index: 6, kind: output, shape index: {1}]  }
   0x1   :  { %13 = vsyncpa [#allocation6], 0 }
   0x2   :  { %14 = vsyncpa [#allocation9], 0 }
   0x3   :  { %15 = vsyncpa [#allocation4], 0 }
   0x4   :  { %16 = vsyncpa [#allocation12], 0  ;;  %s661_s21 = smov [#allocation5]   ;;  %s519_s25 = scalar_lea.hbm %s822_s1, 256 }
   0x5   :  { %s32_s22 = sshll.u32 %s661_s21, 4  ;;  %p520_p0 = scmp.ne.s32.totalorder %s822_s1, %s519_s25  ;;  %s33_s22 = int_to_ptr.vmem [resolvable:$true] %s32_s22 }
   0x6   :  { %p523_p1 = scmp.lt.u32.totalorder %s519_s25, %s822_s1 }
   0x8   :  { %p525_p2 = pnand %p523_p1, %p520_p0 }
   0xa   :  { %528 = shalt.err (!%p525_p2)
}
   0xb   :  { %s529_s30 = scalar_lea.vmem %s33_s22, 256  ;;  %p534_p4 = scmp.lt.s32.totalorder %s33_s22, %s33_s22 }
   0xc   :  { %p530_p3 = scmp.ne.s32.totalorder %s33_s22, %s529_s30  ;;  %p535_p5 = scmp.lt.s32.totalorder %s529_s30, %s529_s30 }
   0xe   :  { %p536_p6 = por %p535_p5, %p534_p4 }
  0x10   :  { %p537_p7 = pnand %p536_p6, %p530_p3 }
  0x12   :  { %540 = shalt.err (!%p537_p7)
}
  0x13   :  { %s662_s7 = smov 128   ;;  %s663_s8 = smov 8  }
  0x14   :  { %38 = dma.hbm_to_vmem [thread:$0]  %s822_s1, 256, %s33_s22, [#allocation6], %s662_s7, %s662_s7, %s663_s8  }
  0x15   :  { %s664_s11 = smov [#allocation2]   ;;  %s665_s13 = smov [#allocation7]  }
  0x16   :  { %s23_s12 = sshll.u32 %s664_s11, 4  ;;  %s44_s14 = sshll.u32 %s665_s13, 4  ;;  %s24_s12 = int_to_ptr.vmem [resolvable:$true] %s23_s12  ;;  %s45_s14 = int_to_ptr.vmem [resolvable:$true] %s44_s14 }
  0x17   :  { %s541_s17 = scalar_lea.hbm %s821_s0, 32 }
  0x18   :  { %p542_p8 = scmp.ne.s32.totalorder %s821_s0, %s541_s17  ;;  %p545_p9 = scmp.lt.u32.totalorder %s541_s17, %s821_s0 }
  0x1a   :  { %p547_p10 = pnand %p545_p9, %p542_p8 }
  0x1c   :  { %550 = shalt.err (!%p547_p10)
}
  0x1d   :  { %s551_s1 = scalar_lea.vmem %s24_s12, 32  ;;  %p556_p12 = scmp.lt.s32.totalorder %s24_s12, %s24_s12 }
  0x1e   :  { %p552_p11 = scmp.ne.s32.totalorder %s24_s12, %s551_s1  ;;  %p557_p13 = scmp.lt.s32.totalorder %s551_s1, %s551_s1 }
  0x20   :  { %p558_p0 = por %p557_p13, %p556_p12 }
  0x22   :  { %p559_p1 = pnand %p558_p0, %p552_p11 }
  0x24   :  { %562 = shalt.err (!%p559_p1)
}
  0x25   :  { %26 = dma.hbm_to_vmem [thread:$0]  %s821_s0, 32, %s24_s12, [#allocation3]  }
  0x26   :  { %s563_s26 = scalar_lea.hbm %s823_s2, 512 }
  0x27   :  { %p564_p2 = scmp.ne.s32.totalorder %s823_s2, %s563_s26  ;;  %p567_p3 = scmp.lt.u32.totalorder %s563_s26, %s823_s2 }
  0x29   :  { %p569_p4 = pnand %p567_p3, %p564_p2 }
  0x2b   :  { %572 = shalt.err (!%p569_p4)
}
  0x2c   :  { %s573_s9 = scalar_lea.vmem %s45_s14, 512  ;;  %p578_p6 = scmp.lt.s32.totalorder %s45_s14, %s45_s14 }
  0x2d   :  { %p574_p5 = scmp.ne.s32.totalorder %s45_s14, %s573_s9  ;;  %p579_p7 = scmp.lt.s32.totalorder %s573_s9, %s573_s9 }
  0x2f   :  { %p580_p8 = por %p579_p7, %p578_p6 }
  0x31   :  { %p581_p9 = pnand %p580_p8, %p574_p5 }
  0x33   :  { %584 = shalt.err (!%p581_p9)
}
  0x34   :  { %50 = dma.hbm_to_vmem [thread:$0]  %s823_s2, 512, %s45_s14, [#allocation6], %s662_s7, %s662_s7, %s663_s8  }
  0x35   :  { %s666_s11 = smov [#allocation8]   ;;  %s585_s16 = scalar_lea.hbm %s824_s3, 512 }
  0x36   :  { %s56_s12 = sshll.u32 %s666_s11, 4  ;;  %p586_p10 = scmp.ne.s32.totalorder %s824_s3, %s585_s16  ;;  %s57_s12 = int_to_ptr.vmem [resolvable:$true] %s56_s12 }
  0x37   :  { %p589_p11 = scmp.lt.u32.totalorder %s585_s16, %s824_s3 }
  0x39   :  { %p591_p12 = pnand %p589_p11, %p586_p10 }
  0x3b   :  { %594 = shalt.err (!%p591_p12)
}
  0x3c   :  { %s595_s21 = scalar_lea.vmem %s57_s12, 512  ;;  %p600_p0 = scmp.lt.s32.totalorder %s57_s12, %s57_s12 }
  0x3d   :  { %p596_p13 = scmp.ne.s32.totalorder %s57_s12, %s595_s21  ;;  %p601_p1 = scmp.lt.s32.totalorder %s595_s21, %s595_s21 }
  0x3f   :  { %p602_p2 = por %p601_p1, %p600_p0 }
  0x41   :  { %p603_p3 = pnand %p602_p2, %p596_p13 }
  0x43   :  { %606 = shalt.err (!%p603_p3)
}
  0x44   :  { %62 = dma.hbm_to_vmem [thread:$0]  %s824_s3, 512, %s57_s12, [#allocation9], %s662_s7, %s662_s7, %s663_s8  }
  0x45   :  { %651 = dma.done.wait [#allocation3], 32  }
  0x46   :  { %652 = vsyncadd [#allocation3], 4294967264 }
  0x47   :  { %653 = dma.done.wait [#allocation6], 768  }
  0x48   :  { %654 = vsyncadd [#allocation6], 4294966528 }
  0x49   :  { %655 = dma.done.wait [#allocation9], 512  }
  0x4a   :  { %656 = vsyncadd [#allocation9], 4294966784  ;;  %v667_v0 = vmov 0.0|0.0   ;;  %vm668_vm0 = vmmov 0   ;;  %v669_v1 = vmov 0.0   ;;  %v166_v2 = vld [vmem:[#allocation7] sm:$0xff]  ;;  %v247_v19 = vlaneseq }
  0x4b   :  { %486 = vmatprep.subr.bf16.mxu1 %v667_v0  ;;  %475 = vmatprep.mubr.msk.f32.mxu1 %vm668_vm0, %v669_v1  ;;  %v167_v3 = vld [vmem:[#allocation7 + $0x8] sm:$0xff]  ;;  %v79_v4 = vld [vmem:[#allocation8] sm:$0xff]  ;;  %v168_v7 = vld [vmem:[#allocation7 + $0x10] sm:$0xff]  ;;  %vm83_vm1 = vcmask 261120   ;;  %v670_v17 = vmov 1966171168  }
  0x4c   :  { %v487_v5 = vpack.c.bf16 %v167_v3, %v166_v2  ;;  %v80_v6 = vld [vmem:[#allocation8 + $0x8] sm:$0xff]  ;;  %v169_v8 = vld [vmem:[#allocation7 + $0x18] sm:$0xff]  ;;  %v81_v10 = vld [vmem:[#allocation8 + $0x10] sm:$0xff]  ;;  %v245_v18 = vunpack.c.l.s4 %v670_v17  ;;  %v775_v21 = vshrl.u32 %v247_v19, 7  ;;  %v298_v43 = vand.u32 127, %v247_v19 }
  0x4d   :  { %v478_v9 = vpack.c.bf16 %v80_v6, %v79_v4  ;;  %v82_v11 = vld [vmem:[#allocation8 + $0x18] sm:$0xff]  ;;  %v490_v12 = vpack.c.bf16 %v169_v8, %v168_v7  ;;  %v766_v14 = vld [vmem:[#allocation5] sm:$0xff]  ;;  %v165_v15 = vld [vmem:[#allocation2] sm:$0x3]  ;;  %vm307_vm2 = vcmask 1041409   ;;  %vm310_vm3 = vcmask 58368  }
  0x4e   :  { %488 = vmatpush3.bf16.msra.mxu1 %v487_v5  ;;  %v482_v13 = vpack.c.bf16 %v82_v11, %v81_v10  ;;  %464 = vmatprep.mubr.msk.f32.mxu0 %vm83_vm1, %v766_v14  ;;  %v770_v16 = vld [vmem:[#allocation5 + $0x8] sm:$0xff]  ;;  %v246_v20 = vunpack.c.0.s8 %v245_v18  ;;  %v268_v26 = vsub.s32 0, %v775_v21  ;;  %v444_v36 = vld [vmem:[%s825_s4] ss:$0 sm:$0xff]  ;;  %v301_v45 = vsub.s32 %v298_v43, %v775_v21  ;;  %s672_s4 = smov [#allocation11]  }
  0x4f   :  { %479 = vmatprep.subr.bf16.mxu0 %v478_v9  ;;  %489 = vmatprep.subr.bf16.mxu1 %v667_v0  ;;  %v671_v51 = vmov 0   ;;  %v321_v52 = vsub.s32 1, %v775_v21  ;;  %s426_s8 = sshll.u32 %s672_s4, 4  ;;  %s427_s8 = int_to_ptr.vmem [resolvable:$true] %s426_s8 }
  0x50   :  { %481 = vmatpush3.bf16.msra.mxu0 %v478_v9  ;;  %v249_v22 = vsub.s32 %v246_v20, %v775_v21  ;;  %506 = vset.pattern.permute.xlu0 %v671_v51  ;;  %s607_s1 = scalar_lea.vmem %s427_s8, 32  ;;  %p612_p5 = scmp.lt.s32.totalorder %s427_s8, %s427_s8 }
  0x51   :  { %483 = vmatprep.subr.bf16.mxu0 %v482_v13  ;;  %505 = vset.pattern.permute.xlu1 %v671_v51  ;;  %p608_p4 = scmp.ne.s32.totalorder %s427_s8, %s607_s1  ;;  %p613_p6 = scmp.lt.s32.totalorder %s607_s1, %s607_s1 }
  0x52   :  { %491 = vmatpush3.bf16.msra.mxu1 %v490_v12 }
  0x53   :  { %p614_p7 = por %p613_p6, %p612_p5 }
  0x54   :  { %485 = vmatpush3.bf16.msra.mxu0 %v482_v13 }
  0x55   :  { %476 = vmatmul.mubr.msk.f32.vlgmr.msra.gmra.mrb[0].mxu1 %vm83_vm1, %v165_v15  ;;  %p615_p8 = pnand %p614_p7, %p608_p4 }
  0x57   :  { %465 = vmatmul.mubr.msk.f32.vlgmr.msra.gmra.mrb[0].mxu0 %vm83_vm1, %v770_v16 }
 0x128   :  { %v239_v23 = vpop.f32.mrb[0].mxu1 }
 0x129   :  { %v250_v24 = vrot.slane %v239_v23, %v249_v22  ;;  %v477_v25 = vpop.f32.mrb[1].mxu1 }
 0x12a   :  { %v466_v27 = vpop.f32.mrb[0].mxu0 }
 0x12b   :  { %v251_v28 = vcombine.high %v250_v24, %v250_v24  ;;  %v258_v29 = vrot.slane %v250_v24, %v249_v22  ;;  %v156_v30 = vpop.f32.mrb[1].mxu0 }
 0x12d   :  { %v265_v31 = vrot.slane %v251_v28, %v249_v22  ;;  %v269_v32 = vrot.slane %v258_v29, %v268_v26 }
 0x12f   :  { %v273_v33 = vrot.slane %v265_v31, %v268_v26  ;;  %v276_v34 = vadd.f32 %v269_v32, %v156_v30 }
 0x131   :  { %v277_v35 = vadd.f32 %v466_v27, %v273_v33  ;;  %507 = vtanh.f32 %v276_v34 }
 0x133   :  { %509 = vtanh.f32 %v277_v35 }
 0x13b   :  { %v508_v37 = vpop.eup %507 }
 0x13c   :  { %v287_v38 = vmul.f32 %v508_v37, %v444_v36 }
 0x13d   :  { %v510_v39 = vpop.eup %509 }
 0x13e   :  { %v289_v40 = vsel %vm83_vm1, %v287_v38, 0.0  ;;  %v288_v41 = vmul.f32 %v510_v39, %v444_v36 }
 0x13f   :  { %290 = vadd.xlane.f32.xlu0 %v289_v40 }
 0x140   :  { %v292_v42 = vsel %vm83_vm1, %v288_v41, 0.0 }
 0x143   :  { %293 = vadd.xlane.f32.xlu0 %v292_v42 }
 0x1cc   :  { %v291_v44 = vpop.xlane.xlu0 %290 }
 0x1cd   :  { %v302_v47 = vrot.slane %v291_v44, %v301_v45 }
 0x1d0   :  { %v294_v46 = vpop.xlane.xlu0 %293 }
 0x1d1   :  { %v306_v48 = vrot.slane %v294_v46, %v301_v45 }
 0x1d3   :  { %v308_v49 = vsel %vm307_vm2, %v306_v48, %v302_v47 }
 0x1d4   :  { %v311_v50 = vsel %vm310_vm3, %v308_v49, -inf }
 0x1d5   :  { %312 = vmax.xlane.f32.xlu1 %v311_v50 }
 0x262   :  { %v313_v53 = vpop.xlane.xlu1 %312 }
 0x263   :  { %v318_v54 = vrot.slane %v313_v53, %v268_v26  ;;  %v322_v55 = vrot.slane %v313_v53, %v321_v52 }
 0x265   :  { %v325_v56 = vsub.f32 %v291_v44, %v318_v54  ;;  %v326_v57 = vsub.f32 %v294_v46, %v322_v55 }
 0x267   :  { %v327_v58 = vmul.f32 1.442695, %v325_v56  ;;  %v329_v59 = vmul.f32 1.442695, %v326_v57 }
 0x269   :  { %511 = vpow2.f32 %v327_v58 }
 0x26a   :  { %513 = vpow2.f32 %v329_v59 }
 0x273   :  { %v512_v60 = vpop.eup %511 }
 0x274   :  { %v514_v61 = vpop.eup %513  ;;  %334 = vperm.xlu1 %505, %v512_v60  }
 0x275   :  { %337 = vperm.xlu0 %506, %v514_v61  }
 0x2f3   :  { %v335_v62 = vpop.permute.xlu1 %334 }
 0x2f4   :  { %v338_v63 = vpop.permute.xlu0 %337  ;;  %v342_v0 = vrot.slane %v335_v62, %v301_v45 }
 0x2f5   :  { %v346_v1 = vrot.slane %v338_v63, %v301_v45 }
 0x2f7   :  { %v347_v2 = vsel %vm307_vm2, %v346_v1, %v342_v0 }
 0x2f8   :  { %v349_v3 = vsel %vm310_vm3, %v347_v2, 0.0 }
 0x2f9   :  { %350 = vadd.xlane.f32.xlu1 %v349_v3 }
 0x386   :  { %v351_v4 = vpop.xlane.xlu1 %350 }
 0x387   :  { %v356_v5 = vrot.slane %v351_v4, %v268_v26  ;;  %v360_v6 = vrot.slane %v351_v4, %v321_v52 }
 0x389   :  { %515 = vrcp.f32 %v356_v5 }
 0x38a   :  { %517 = vrcp.f32 %v360_v6 }
 0x393   :  { %v516_v7 = vpop.eup %515 }
 0x394   :  { %v364_v8 = vmul.f32 %v516_v7, %v512_v60  ;;  %v518_v9 = vpop.eup %517 }
 0x395   :  { %v366_v10 = vmul.f32 %v518_v9, %v514_v61 }
 0x396   :  { %369 = vperm.xlu0 %506, %v364_v8  }
 0x39a   :  { %374 = vperm.xlu0 %506, %v366_v10  }
 0x415   :  { %v370_v11 = vpop.permute.xlu0 %369 }
 0x416   :  { %v377_v12 = vmul.f32 %v370_v11, %v766_v14  ;;  %v402_v18 = vrot.slane %v370_v11, %v301_v45 }
 0x418   :  { %v379_v13 = vsel %vm83_vm1, %v377_v12, 0.0 }
 0x419   :  { %v380_v15 = vrot.slane %v379_v13, 4  ;;  %v375_v17 = vpop.permute.xlu0 %374 }
 0x41a   :  { %v378_v19 = vmul.f32 %v375_v17, %v770_v16  ;;  %v406_v20 = vrot.slane %v375_v17, %v301_v45 }
 0x41b   :  { %v381_v21 = vadd.f32 %v380_v15, %v379_v13 }
 0x41c   :  { %v386_v22 = vsel %vm83_vm1, %v378_v19, 0.0  ;;  %v407_v23 = vsel %vm307_vm2, %v406_v20, %v402_v18 }
 0x41d   :  { %v382_v24 = vrot.slane %v381_v21, 2  ;;  %v387_v25 = vrot.slane %v386_v22, 4  ;;  %409 = vst.msk [vmem:[#allocation11] sm:$0x3] %vm310_vm3, %v407_v23 }
 0x41e   :  { %618 = shalt.err (!%p615_p8)
}
 0x41f   :  { %s619_s24 = scalar_lea.hbm %s827_s6, 32 }
 0x420   :  { %p620_p9 = scmp.ne.s32.totalorder %s827_s6, %s619_s24  ;;  %p623_p10 = scmp.lt.u32.totalorder %s619_s24, %s827_s6 }
 0x422   :  { %p625_p11 = pnand %p623_p10, %p620_p9 }
 0x424   :  { %628 = shalt.err (!%p625_p11)
}
 0x425   :  { %429 = dma.vmem_to_hbm [thread:$0]  %s427_s8, 32, %s827_s6, [#allocation12]   ;;  %v383_v14 = vadd.f32 %v382_v24, %v381_v21  ;;  %v388_v16 = vadd.f32 %v387_v25, %v386_v22  ;;  %vm397_vm4 = vcmask 254976  }
 0x426   :  { %s673_s9 = smov [#allocation10]  }
 0x427   :  { %v389_v26 = vrot.slane %v388_v16, 2  ;;  %v384_v27 = vrot.slane %v383_v14, 1  ;;  %s416_s0 = sshll.u32 %s673_s9, 4  ;;  %s417_s0 = int_to_ptr.vmem [resolvable:$true] %s416_s0 }
 0x428   :  { %s629_s10 = scalar_lea.vmem %s417_s0, 32  ;;  %p634_p13 = scmp.lt.s32.totalorder %s417_s0, %s417_s0 }
 0x429   :  { %v390_v28 = vadd.f32 %v389_v26, %v388_v16  ;;  %v385_v31 = vadd.f32 %v384_v27, %v383_v14  ;;  %p630_p12 = scmp.ne.s32.totalorder %s417_s0, %s629_s10  ;;  %p635_p0 = scmp.lt.s32.totalorder %s629_s10, %s629_s10 }
 0x42b   :  { %v391_v29 = vrot.slane %v390_v28, 1  ;;  %p636_p1 = por %p635_p0, %p634_p13 }
 0x42d   :  { %v392_v30 = vadd.f32 %v391_v29, %v390_v28  ;;  %p637_p2 = pnand %p636_p1, %p630_p12 }
 0x42f   :  { %v395_v32 = vsel %vm307_vm2, %v392_v30, %v385_v31 }
 0x430   :  { %398 = vst.msk [vmem:[#allocation10] sm:$0x3] %vm397_vm4, %v395_v32 }
 0x431   :  { %640 = shalt.err (!%p637_p2)
}
 0x432   :  { %s641_s12 = scalar_lea.hbm %s826_s5, 32 }
 0x433   :  { %p642_p3 = scmp.ne.s32.totalorder %s826_s5, %s641_s12  ;;  %p645_p4 = scmp.lt.u32.totalorder %s641_s12, %s826_s5 }
 0x435   :  { %p647_p5 = pnand %p645_p4, %p642_p3 }
 0x437   :  { %650 = shalt.err (!%p647_p5)
}
 0x438   :  { %419 = dma.vmem_to_hbm [thread:$0]  %s417_s0, 32, %s826_s5, [#allocation4]  }
 0x439   :  { %657 = dma.done.wait [#allocation4], 32  }
 0x43a   :  { %658 = vsyncadd [#allocation4], 4294967264 }
 0x43b   :  { %659 = dma.done.wait [#allocation12], 32  }
 0x43c   :  { %660 = vsyncadd [#allocation12], 4294967264 }
 0x43d   :  { %436 = vsyncpa [#allocation3], 1 }
 0x43e   :  { %437 = vsyncpa [#allocation6], 1 }
 0x43f   :  { %438 = vsyncpa [#allocation9], 1 }
 0x440   :  { %439 = vsyncpa [#allocation4], 1 }
 0x441   :  { %440 = vsyncpa [#allocation12], 1 }

</bundles_post_ra>
